<compile_context>
chip_gen: v5e
topology: v5e:2x2
jax: 0.10.0
libtpu: 0.0.40
codegen_flags: <defaults>
</compile_context>

<pallas_src>
import jax
import jax.numpy as jnp
from jax import lax
from jax.experimental import pallas as pl
from jax.experimental.pallas import tpu as pltpu


def _linear_relu_kernel(x_ref, w_ref, b_ref, o_ref, acc_ref):
    # x_ref  : (TM, TK)  input tile
    # w_ref  : (TN, TK)  weight tile in PyTorch layout [hidden, input]
    # b_ref  : (1,  TN)  bias tile
    # o_ref  : (TM, TN)  output tile (resident across the K axis)
    # acc_ref: (TM, TN)  f32 accumulator scratch
    k = pl.program_id(2)

    @pl.when(k == 0)
    def _():
        acc_ref[...] = jnp.zeros_like(acc_ref)

    # Contract x[:, K] with w[:, K] along K — trans-B handled by the MXU,
    # no transpose materialized in HBM or VMEM.
    acc_ref[...] += lax.dot_general(
        x_ref[...], w_ref[...],
        dimension_numbers=(((1,), (1,)), ((), ())),
        preferred_element_type=jnp.float32,
    )

    @pl.when(k == pl.num_programs(2) - 1)
    def _():
        y = acc_ref[...] + b_ref[...].astype(jnp.float32)
        o_ref[...] = jnp.maximum(y, 0.0).astype(o_ref.dtype)


def _pick_tile(dim, target, align, must_divide):
    """Largest tile <= target that is a multiple of `align`.

    If the full dim fits under `target`, use the full dim (always a legal
    block shape). For reduction axes (`must_divide=True`) the tile must divide
    the dim exactly so padded garbage never enters the accumulator; if no
    aligned divisor exists we fall back to the full (untiled) dim.
    """
    if dim <= target:
        return dim
    t = (target // align) * align
    if not must_divide:
        return max(t, align)
    while t >= align:
        if dim % t == 0:
            return t
        t -= align
    return dim


def linear_with_no_dropout(x, weight, bias, *,
                           tile_m=None, tile_n=None, tile_k=None,
                           compute_dtype=None):
    """y = relu(x @ weight.T + bias)

    x:      [B, input_dim]
    weight: [hidden_dim, input_dim]   (PyTorch nn.Linear layout, NOT transposed)
    bias:   [hidden_dim]
    compute_dtype: optional cast for x/weight (e.g. jnp.bfloat16 on v6e/v7x);
                   accumulation is always f32.
    """
    B, K = x.shape
    H, K2 = weight.shape
    assert K == K2, "input_dim mismatch"
    assert bias.shape == (H,), "bias shape mismatch"

    # TODO(synk): for tiny shapes (K, H << 128) a fused XLA matmul+bias+ReLU is
    # faster than any pallas_call; a shape guard could dispatch there.

    if compute_dtype is not None:
        x = x.astype(compute_dtype)
        weight = weight.astype(compute_dtype)

    sub = 16 if x.dtype == jnp.bfloat16 else 8  # sublane packing per dtype

    tm = tile_m if tile_m is not None else _pick_tile(B, 512, sub, False)
    tn = tile_n if tile_n is not None else _pick_tile(H, 512, 128, False)
    tk = tile_k if tile_k is not None else _pick_tile(K, 512, 128, True)

    # Validate caller-supplied tiles against the (8,128)/full-dim rule and the
    # no-partial-K-tiles requirement (padded K rows would pollute the accumulator).
    if tm != B:
        assert tm % sub == 0, f"tile_m={tm} must be a multiple of {sub} (or == B)"
    if tn != H:
        assert tn % 128 == 0, f"tile_n={tn} must be a multiple of 128 (or == H)"
    if tk != K:
        assert tk % 128 == 0 and K % tk == 0, (
            f"tile_k={tk} must be a multiple of 128 that divides K={K}")

    b2 = bias.reshape(1, H)
    out_dtype = x.dtype

    grid = (pl.cdiv(B, tm), pl.cdiv(H, tn), pl.cdiv(K, tk))

    cost = pl.CostEstimate(
        flops=2 * B * K * H,
        transcendentals=0,
        bytes_accessed=(x.size * x.dtype.itemsize
                        + weight.size * weight.dtype.itemsize
                        + b2.size * b2.dtype.itemsize
                        + B * H * jnp.dtype(out_dtype).itemsize),
    )

    return pl.pallas_call(
        _linear_relu_kernel,
        out_shape=jax.ShapeDtypeStruct((B, H), out_dtype),
        grid_spec=pltpu.PrefetchScalarGridSpec(
            num_scalar_prefetch=0,
            grid=grid,
            in_specs=[
                pl.BlockSpec((tm, tk), lambda i, j, k: (i, k)),  # x tile
                pl.BlockSpec((tn, tk), lambda i, j, k: (j, k)),  # weight tile [H,K]
                pl.BlockSpec((1, tn), lambda i, j, k: (0, j)),   # bias tile
            ],
            out_specs=pl.BlockSpec((tm, tn), lambda i, j, k: (i, j)),
            scratch_shapes=[pltpu.VMEM((tm, tn), jnp.float32)],
        ),
        compiler_params=pltpu.CompilerParams(
            dimension_semantics=("parallel", "parallel", "arbitrary"),
        ),
        cost_estimate=cost,
    )(x, weight, b2)


if __name__ == "__main__":
    key = jax.random.PRNGKey(0)

    # --- Case 1: tiny module-default shape (single block; full-dim tiles) ---
    B, INPUT_DIM, HIDDEN_DIM = 8, 32, 64
    kx, kw, kb = jax.random.split(key, 3)
    bound = 1.0 / (INPUT_DIM ** 0.5)
    x = jax.random.normal(kx, (B, INPUT_DIM), dtype=jnp.float32)
    weight = jax.random.uniform(kw, (HIDDEN_DIM, INPUT_DIM),
                                minval=-bound, maxval=bound, dtype=jnp.float32)
    bias = jax.random.uniform(kb, (HIDDEN_DIM,),
                              minval=-bound, maxval=bound, dtype=jnp.float32)

    out = jax.block_until_ready(linear_with_no_dropout(x, weight, bias))
    ref = jnp.maximum(x @ weight.T + bias, 0.0)
    assert out.shape == (B, HIDDEN_DIM)
    assert jnp.allclose(out, ref, atol=1e-5, rtol=1e-5)

    # --- Case 2: multi-block grid exercising M/N tiling + K reduction axis ---
    B2, K2, H2 = 64, 256, 256
    kx2, kw2, kb2 = jax.random.split(jax.random.PRNGKey(1), 3)
    bound2 = 1.0 / (K2 ** 0.5)
    x2 = jax.random.normal(kx2, (B2, K2), dtype=jnp.float32)
    w2 = jax.random.uniform(kw2, (H2, K2), minval=-bound2, maxval=bound2,
                            dtype=jnp.float32)
    b2 = jax.random.uniform(kb2, (H2,), minval=-bound2, maxval=bound2,
                            dtype=jnp.float32)

    out2 = jax.block_until_ready(
        linear_with_no_dropout(x2, w2, b2, tile_m=16, tile_n=128, tile_k=128))
    ref2 = jnp.maximum(x2 @ w2.T + b2, 0.0)
    assert out2.shape == (B2, H2)
    assert jnp.allclose(out2, ref2, atol=1e-4, rtol=1e-4)

    print("KERNEL_OK")
</pallas_src>

<mosaic_0001>
module attributes {stable_mosaic.version = 11 : i64} {
  func.func @_linear_relu_kernel(%arg0: i32, %arg1: i32, %arg2: i32, %arg3: memref<8x32xf32, #tpu.memory_space<vmem>>, %arg4: memref<64x32xf32, #tpu.memory_space<vmem>>, %arg5: memref<1x64xf32, #tpu.memory_space<vmem>>, %arg6: memref<8x64xf32, #tpu.memory_space<vmem>>, %arg7: memref<8x64xf32, #tpu.memory_space<vmem>>) attributes {dimension_semantics = [#tpu.dimension_semantics<parallel>, #tpu.dimension_semantics<parallel>, #tpu.dimension_semantics<arbitrary>], iteration_bounds = array<i64: 1, 1, 1>, scalar_prefetch = 0 : i64, scratch_operands = 1 : i64, tpu.core_type = #tpu.core_type<tc>, window_params = [{transform_indices = @transform_0, window_bounds = array<i64: 8, 32>}, {transform_indices = @transform_1, window_bounds = array<i64: 64, 32>}, {transform_indices = @transform_2, window_bounds = array<i64: 1, 64>}, {transform_indices = @transform_3, window_bounds = array<i64: 8, 64>}]} {
    %c0_i32 = arith.constant 0 : i32
    %0 = arith.cmpi eq, %arg2, %c0_i32 : i32
    %1 = arith.extui %0 : i1 to i32
    %c0_i32_0 = arith.constant 0 : i32
    %2 = arith.cmpi ne, %1, %c0_i32_0 : i32
    scf.if %2 {
      %cst_10 = arith.constant 0.000000e+00 : f32
      %12 = vector.broadcast %cst_10 : f32 to vector<8x64xf32>
      %c0_11 = arith.constant 0 : index
      %c0_12 = arith.constant 0 : index
      %13 = vector.load %arg7[%c0_11, %c0_12] : memref<8x64xf32, #tpu.memory_space<vmem>>, vector<8x64xf32>
      tpu.vector_store %arg7[%c0_11, %c0_12], %12 {strides = array<i32>} : memref<8x64xf32, #tpu.memory_space<vmem>>, vector<8x64xf32>,
    } else {
    }
    %c0 = arith.constant 0 : index
    %c0_1 = arith.constant 0 : index
    %3 = vector.load %arg7[%c0, %c0_1] : memref<8x64xf32, #tpu.memory_space<vmem>>, vector<8x64xf32>
    %c0_2 = arith.constant 0 : index
    %c0_3 = arith.constant 0 : index
    %4 = vector.load %arg3[%c0_2, %c0_3] : memref<8x32xf32, #tpu.memory_space<vmem>>, vector<8x32xf32>
    %c0_4 = arith.constant 0 : index
    %c0_5 = arith.constant 0 : index
    %5 = vector.load %arg4[%c0_4, %c0_5] : memref<64x32xf32, #tpu.memory_space<vmem>>, vector<64x32xf32>
    %cst = arith.constant dense<0.000000e+00> : vector<8x64xf32>
    %6 = tpu.matmul %4, %5, %cst {dimension_numbers = #tpu.dot_dimension_numbers<[1], [1], [0], [0], [0, 0, 1, 0], [], []>} : vector<8x32xf32>, vector<64x32xf32>, vector<8x64xf32> -> vector<8x64xf32>
    %7 = arith.addf %3, %6 : vector<8x64xf32>
    %c0_6 = arith.constant 0 : index
    %c0_7 = arith.constant 0 : index
    %8 = vector.load %arg7[%c0_6, %c0_7] : memref<8x64xf32, #tpu.memory_space<vmem>>, vector<8x64xf32>
    tpu.vector_store %arg7[%c0_6, %c0_7], %7 {strides = array<i32>} : memref<8x64xf32, #tpu.memory_space<vmem>>, vector<8x64xf32>,
    %c0_i32_8 = arith.constant 0 : i32
    %9 = arith.cmpi eq, %arg2, %c0_i32_8 : i32
    %10 = arith.extui %9 : i1 to i32
    %c0_i32_9 = arith.constant 0 : i32
    %11 = arith.cmpi ne, %10, %c0_i32_9 : i32
    scf.if %11 {
      %c0_10 = arith.constant 0 : index
      %c0_11 = arith.constant 0 : index
      %12 = vector.load %arg7[%c0_10, %c0_11] : memref<8x64xf32, #tpu.memory_space<vmem>>, vector<8x64xf32>
      %c0_12 = arith.constant 0 : index
      %c0_13 = arith.constant 0 : index
      %13 = vector.load %arg5[%c0_12, %c0_13] : memref<1x64xf32, #tpu.memory_space<vmem>>, vector<1x64xf32>
      %14 = vector.broadcast %13 : vector<1x64xf32> to vector<8x64xf32>
      %15 = arith.addf %12, %14 : vector<8x64xf32>
      %cst_14 = arith.constant 0.000000e+00 : f32
      %16 = vector.broadcast %cst_14 : f32 to vector<8x64xf32>
      %17 = arith.maximumf %15, %16 : vector<8x64xf32>
      %c0_15 = arith.constant 0 : index
      %c0_16 = arith.constant 0 : index
      %18 = vector.load %arg6[%c0_15, %c0_16] : memref<8x64xf32, #tpu.memory_space<vmem>>, vector<8x64xf32>
      tpu.vector_store %arg6[%c0_15, %c0_16], %17 {strides = array<i32>} : memref<8x64xf32, #tpu.memory_space<vmem>>, vector<8x64xf32>,
    } else {
    }
    return
  }
  func.func @transform_0(%arg0: i32, %arg1: i32, %arg2: i32) -> (i32, i32) {
    %c0_i32 = arith.constant 0 : i32
    return %arg0, %arg2 : i32, i32
  }
  func.func @transform_1(%arg0: i32, %arg1: i32, %arg2: i32) -> (i32, i32) {
    %c0_i32 = arith.constant 0 : i32
    return %arg1, %arg2 : i32, i32
  }
  func.func @transform_2(%arg0: i32, %arg1: i32, %arg2: i32) -> (i32, i32) {
    %c0_i32 = arith.constant 0 : i32
    %c0_i32_0 = arith.constant 0 : i32
    return %c0_i32, %arg1 : i32, i32
  }
  func.func @transform_3(%arg0: i32, %arg1: i32, %arg2: i32) -> (i32, i32) {
    %c0_i32 = arith.constant 0 : i32
    return %arg0, %arg1 : i32, i32
  }
}

</mosaic_0001>

<bundles_post_ra>
// kernel: tpu_custom_call.1
= control target key start
LH: loop header
LB: loop body
LE: loop exit
PB: predicated region body
PF: predicated region fallthrough
CT: control target
= control target key end

     0   :  { %vm31_vm0 = vcmask 261120   ;;  %vm19_vm1 = vcmask 523264   ;;  %v147_v1 = vmov 0.0   ;;  %s214_s0 = inlined_call_operand.vmem [shape: f32[8,32], index: 0, kind: input, shape index: {}]   ;;  %s215_s1 = inlined_call_operand.vmem [shape: f32[64,32], index: 1, kind: input, shape index: {}]   ;;  %s216_s2 = inlined_call_operand.vmem [shape: f32[1,64], index: 2, kind: input, shape index: {}]   ;;  %s217_s3 = inlined_call_operand.hbm [shape: f32[8,64], index: 3, kind: output, shape index: {}]  }
   0x1   :  { %v30_v0 = vld [vmem:[%s215_s1 + $0x38] sm:$0xff]  ;;  %20 = vst.msk [vmem:[#allocation2] sm:$0xff] %vm19_vm1, %v147_v1  ;;  %v29_v2 = vld [vmem:[%s215_s1 + $0x30] sm:$0xff] }
   0x2   :  { %109 = vmatpush.xpose.msk.msra.mxu0 %vm31_vm0, %v30_v0 }
   0x3   :  { %8 = vsyncpa [#allocation4], 0  ;;  %v28_v3 = vld [vmem:[%s215_s1 + $0x28] sm:$0xff]  ;;  %v27_v4 = vld [vmem:[%s215_s1 + $0x20] sm:$0xff]  ;;  %s148_s5 = smov [#allocation3]   ;;  %s100_s8 = sshll.u32 %s217_s3, 4  ;;  %s101_s8 = int_to_ptr.hbm [resolvable:$true] %s100_s8 }
   0x4   :  { %v26_v5 = vld [vmem:[%s215_s1 + $0x18] sm:$0xff]  ;;  %v25_v6 = vld [vmem:[%s215_s1 + $0x10] sm:$0xff]  ;;  %v24_v7 = vld [vmem:[%s215_s1 + $0x8] sm:$0xff] }
   0x5   :  { %v23_v8 = vld [vmem:[%s215_s1] sm:$0xff]  ;;  %s98_s1 = sshll.u32 %s148_s5, 4  ;;  %s99_s1 = int_to_ptr.vmem [resolvable:$true] %s98_s1 }
   0x6   :  { %110 = vmatpush.xpose.msk.msra.mxu0 %vm31_vm0, %v29_v2  ;;  %v22_v9 = vld [vmem:[%s214_s0] sm:$0xff] }
   0x7   :  { %v120_v13 = vld [vmem:[%s216_s2] ss:$0 sm:$0xff] }
   0x8   :  { %v21_v10 = vld [vmem:[#allocation2] sm:$0xff] }
   0xa   :  { %111 = vmatpush.xpose.msk.msra.mxu0 %vm31_vm0, %v28_v3 }
   0xe   :  { %112 = vmatpush.xpose.msk.msra.mxu0 %vm31_vm0, %v27_v4 }
  0x12   :  { %113 = vmatpush.xpose.msk.msra.mxu0 %vm31_vm0, %v26_v5 }
  0x16   :  { %114 = vmatpush.xpose.msk.msra.mxu0 %vm31_vm0, %v25_v6 }
  0x1a   :  { %115 = vmatpush.xpose.msk.msra.mxu0 %vm31_vm0, %v24_v7 }
  0x1e   :  { %116 = vmatpush.xpose.msk.msra.mxu0 %vm31_vm0, %v23_v8 }
  0x21   :  { %117 = vmatmul.msk.f32.vlgmr.msra.gmra.mxu0 %vm31_vm0, %v22_v9 }
  0x9e   :  { %v76_v11 = vpop.f32.mrf.mxu0 }
  0x9f   :  { %v79_v12 = vadd.f32 %v76_v11, %v21_v10 }
  0xa1   :  { %81 = vst.msk [vmem:[#allocation2] sm:$0xff] %vm19_vm1, %v79_v12 }
  0xa8   :  { %v85_v14 = vld [vmem:[#allocation2] sm:$0xff] }
  0xa9   :  { %v90_v15 = vadd.f32 %v120_v13, %v85_v14 }
  0xab   :  { %v91_v16 = vmax.f32 %v90_v15, 0.0 }
  0xad   :  { %92 = vst.msk [vmem:[#allocation3] sm:$0xff] %vm19_vm1, %v91_v16 }
  0xae   :  { %103 = dma.vmem_to_hbm [thread:$0]  %s99_s1, 128, %s101_s8, [#allocation4]  }
  0xaf   :  { %145 = dma.done.wait [#allocation4], 128  }
  0xb0   :  { %146 = vsyncadd [#allocation4], 4294967168 }
  0xb1   :  { %108 = vsyncpa [#allocation4], 1 }

</bundles_post_ra>
